<compile_context>
chip_gen: v5e
topology: v5e:2x2
jax: 0.10.0
libtpu: 0.0.40
codegen_flags: <defaults>
</compile_context>

<pallas_src>
import functools
import math

import jax
import jax.numpy as jnp
from jax.experimental import pallas as pl
from jax.experimental.pallas import tpu as pltpu


# ----------------------------------------------------------------------------
# helpers
# ----------------------------------------------------------------------------
def _round_up(x, m):
    return (x + m - 1) // m * m


def _vmem_limit(tile_bytes):
    """Per-generation VMEM budget: ~96 MiB on v5e/v6e (128 MiB physical),
    ~48 MiB on v7x (64 MiB physical)."""
    try:
        cap = int(pltpu.get_tpu_info().vmem_capacity_bytes)
    except Exception:
        cap = 64 << 20
    cap = min(cap * 3 // 4, 100 << 20)
    return int(min(max(2 * tile_bytes, 32 << 20), cap))


def _plan_rows(M):
    """Pick a row tile that divides round_up(M, 8) when possible so the
    wrappers never pad/slice the activations between kernels."""
    M8 = _round_up(M, 8)
    if M8 <= 512:
        return M8, M8
    for cand in range(512, 63, -8):
        if M8 % cand == 0:
            return cand, M8
    tm = 256
    return tm, _round_up(M8, tm)


def _pick_tq(S):
    if S <= 256:
        return S
    for cand in range(256, 7, -8):
        if S % cand == 0:
            return cand
    return S


# ----------------------------------------------------------------------------
# fused Linear (+bias, optional ReLU) kernel
# ----------------------------------------------------------------------------
def _linear_kernel(x_ref, w_ref, b_ref, o_ref, *, apply_relu):
    # x: (tm, K) bf16   w: (K, tn) bf16   b: (1, tn) f32   o: (tm, tn) out_dtype
    acc = jnp.dot(x_ref[...], w_ref[...], preferred_element_type=jnp.float32)
    acc = acc + b_ref[...]
    if apply_relu:
        acc = jnp.maximum(acc, 0.0)
    o_ref[...] = acc.astype(o_ref.dtype)


def pallas_linear(x, w_t, b, *, relu=False, out_dtype=jnp.bfloat16,
                  mxu_dtype=jnp.bfloat16):
    """y = x @ w_t + b (optional ReLU). w_t is (in, out). bf16 MXU inputs,
    f32 accumulate, bf16 (by default) intermediates to halve HBM traffic."""
    orig_shape = x.shape
    K = orig_shape[-1]
    N = w_t.shape[1]
    x2 = x.reshape(-1, K)
    M = x2.shape[0]

    tm, M_pad = _plan_rows(M)
    N_pad = _round_up(N, 128)               # lane-dense output stores
    tn = N_pad
    for cand in (1024, 512, 256, 128):
        if N_pad % cand == 0:
            tn = cand
            break
    # TODO(synk): add a K (reduction) grid axis + f32 VMEM accumulator
    # (pl.when init/finalize) before scaling K beyond ~4-8K on v7x (64 MiB VMEM).

    if M_pad != M:
        x2 = jnp.pad(x2, ((0, M_pad - M), (0, 0)))
    if N_pad != N:
        w_t = jnp.pad(w_t, ((0, 0), (0, N_pad - N)))
        b = jnp.pad(b, ((0, N_pad - N),))

    x2 = x2.astype(mxu_dtype)
    w_t = w_t.astype(mxu_dtype)
    b2 = b.reshape(1, N_pad).astype(jnp.float32)

    it = jnp.dtype(mxu_dtype).itemsize
    ot = jnp.dtype(out_dtype).itemsize
    tile_bytes = 2 * (tm * K * it + K * tn * it + tn * 4 + tm * tn * ot)

    out = pl.pallas_call(
        functools.partial(_linear_kernel, apply_relu=relu),
        out_shape=jax.ShapeDtypeStruct((M_pad, N_pad), out_dtype),
        grid_spec=pltpu.PrefetchScalarGridSpec(
            num_scalar_prefetch=0,
            # N outer, M inner: weight/bias tiles keep a constant block index
            # across the inner M sweep (no re-DMA).
            grid=(N_pad // tn, M_pad // tm),
            in_specs=[
                pl.BlockSpec((tm, K), lambda j, i: (i, 0)),
                pl.BlockSpec((K, tn), lambda j, i: (0, j)),
                pl.BlockSpec((1, tn), lambda j, i: (0, j)),
            ],
            out_specs=pl.BlockSpec((tm, tn), lambda j, i: (i, j)),
        ),
        compiler_params=pltpu.CompilerParams(
            dimension_semantics=("parallel", "parallel"),
            vmem_limit_bytes=_vmem_limit(tile_bytes),
        ),
    )(x2, w_t, b2)

    if M_pad != M or N_pad != N:
        out = out[:M, :N]
    return out.reshape(*orig_shape[:-1], N)


# ----------------------------------------------------------------------------
# fused Linear + residual-add + LayerNorm kernel (epilogue fusion, N == E)
# ----------------------------------------------------------------------------
def _linear_add_ln_kernel(x_ref, w_ref, b_ref, r_ref, g_ref, bb_ref, o_ref,
                          *, eps, n_valid):
    acc = jnp.dot(x_ref[...], w_ref[...], preferred_element_type=jnp.float32)
    s = acc + b_ref[...] + r_ref[...].astype(jnp.float32)
    # Padded N columns are exactly zero (zero-padded weight/bias/residual), so
    # moment sums over the padded row divided by the true feature count are exact.
    inv_n = 1.0 / n_valid
    mean = jnp.sum(s, axis=-1, keepdims=True) * inv_n
    ex2 = jnp.sum(s * s, axis=-1, keepdims=True) * inv_n
    var = ex2 - mean * mean
    y = (s - mean) * jax.lax.rsqrt(var + eps)
    o_ref[...] = (y * g_ref[...] + bb_ref[...]).astype(o_ref.dtype)


def pallas_linear_add_ln(x, w_t, b, residual, gamma, beta, *, eps=1e-6,
                         out_dtype=jnp.float32, mxu_dtype=jnp.bfloat16):
    """LayerNorm(residual + (x @ w_t + b)) in one kernel (whole row per tile)."""
    orig_shape = residual.shape
    K = x.shape[-1]
    N = w_t.shape[1]
    x2 = x.reshape(-1, K)
    r2 = residual.reshape(-1, N)
    M = x2.shape[0]

    tm, M_pad = _plan_rows(M)
    N_pad = _round_up(N, 128)

    if M_pad != M:
        x2 = jnp.pad(x2, ((0, M_pad - M), (0, 0)))
        r2 = jnp.pad(r2, ((0, M_pad - M), (0, 0)))
    if N_pad != N:
        w_t = jnp.pad(w_t, ((0, 0), (0, N_pad - N)))
        b = jnp.pad(b, ((0, N_pad - N),))
        r2 = jnp.pad(r2, ((0, 0), (0, N_pad - N)))
        gamma = jnp.pad(gamma, ((0, N_pad - N),))
        beta = jnp.pad(beta, ((0, N_pad - N),))

    x2 = x2.astype(mxu_dtype)
    w_t = w_t.astype(mxu_dtype)
    b2 = b.reshape(1, N_pad).astype(jnp.float32)
    r2 = r2.astype(jnp.float32)
    g2 = gamma.reshape(1, N_pad).astype(jnp.float32)
    bb2 = beta.reshape(1, N_pad).astype(jnp.float32)

    it = jnp.dtype(mxu_dtype).itemsize
    tile_bytes = (2 * (tm * K * it + tm * N_pad * 4
                       + tm * N_pad * jnp.dtype(out_dtype).itemsize)
                  + K * N_pad * it + 3 * N_pad * 4)

    out = pl.pallas_call(
        functools.partial(_linear_add_ln_kernel, eps=eps, n_valid=float(N)),
        out_shape=jax.ShapeDtypeStruct((M_pad, N_pad), out_dtype),
        grid_spec=pltpu.PrefetchScalarGridSpec(
            num_scalar_prefetch=0,
            grid=(M_pad // tm,),
            in_specs=[
                pl.BlockSpec((tm, K), lambda i: (i, 0)),        # activations
                pl.BlockSpec((K, N_pad), lambda i: (0, 0)),     # whole weight (resident)
                pl.BlockSpec((1, N_pad), lambda i: (0, 0)),     # bias
                pl.BlockSpec((tm, N_pad), lambda i: (i, 0)),    # residual
                pl.BlockSpec((1, N_pad), lambda i: (0, 0)),     # gamma
                pl.BlockSpec((1, N_pad), lambda i: (0, 0)),     # beta
            ],
            out_specs=pl.BlockSpec((tm, N_pad), lambda i: (i, 0)),
        ),
        compiler_params=pltpu.CompilerParams(
            dimension_semantics=("parallel",),
            vmem_limit_bytes=_vmem_limit(tile_bytes),
        ),
    )(x2, w_t, b2, r2, g2, bb2)

    if M_pad != M or N_pad != N:
        out = out[:M, :N]
    return out.reshape(orig_shape)


# ----------------------------------------------------------------------------
# attention kernel: logits = qk*scale + pos_bias*scale + neg_mask ; softmax ; @ v
# grid (B, H, q-block): per-step working set stays small (fits v7x's 64 MiB VMEM
# and shards across both v7x TensorCores).
# ----------------------------------------------------------------------------
def _attn_kernel(q_ref, k_ref, v_ref, pb_ref, nm_ref, att_ref, ctx_ref, *, scale):
    q = q_ref[0, 0].astype(jnp.bfloat16)        # (tq, D)
    k = k_ref[0, 0].astype(jnp.bfloat16)        # (S, D)
    v = v_ref[0, 0].astype(jnp.bfloat16)        # (S, D)
    s = jax.lax.dot_general(q, k, (((1,), (1,)), ((), ())),
                            preferred_element_type=jnp.float32)   # (tq, S)
    logits = s * scale + pb_ref[0, 0] + nm_ref[0, 0]
    att_ref[0, 0] = logits.astype(att_ref.dtype)
    m = jnp.max(logits, axis=-1, keepdims=True)
    p = jnp.exp(logits - m)
    l = jnp.sum(p, axis=-1, keepdims=True)
    w = p * pl.reciprocal(l, approx=True)
    ctx = jnp.dot(w.astype(jnp.bfloat16), v, preferred_element_type=jnp.float32)
    ctx_ref[0, 0] = ctx.astype(ctx_ref.dtype)


def pallas_attention(qh, kh, vh, pos_bias_scaled, neg_mask, *, scale):
    """qh/kh/vh: (B,H,S,D); pos_bias_scaled: (1,H,S,S); neg_mask: (B,1,S,S)."""
    B, H, S, D = qh.shape
    tq = _pick_tq(S)
    tile_bytes = 2 * (tq * D * 2 + 2 * S * D * 2 + 2 * tq * S * 4
                      + tq * S * 4 + tq * D * 2)

    att, ctx = pl.pallas_call(
        functools.partial(_attn_kernel, scale=scale),
        out_shape=(
            jax.ShapeDtypeStruct((B, H, S, S), jnp.float32),
            jax.ShapeDtypeStruct((B, H, S, D), jnp.bfloat16),
        ),
        grid_spec=pltpu.PrefetchScalarGridSpec(
            num_scalar_prefetch=0,
            grid=(B, H, S // tq),
            in_specs=[
                pl.BlockSpec((1, 1, tq, D), lambda b, h, i: (b, h, i, 0)),
                pl.BlockSpec((1, 1, S, D), lambda b, h, i: (b, h, 0, 0)),
                pl.BlockSpec((1, 1, S, D), lambda b, h, i: (b, h, 0, 0)),
                pl.BlockSpec((1, 1, tq, S), lambda b, h, i: (0, h, i, 0)),  # pos bias
                pl.BlockSpec((1, 1, tq, S), lambda b, h, i: (b, 0, i, 0)),  # mask term
            ],
            out_specs=(
                pl.BlockSpec((1, 1, tq, S), lambda b, h, i: (b, h, i, 0)),
                pl.BlockSpec((1, 1, tq, D), lambda b, h, i: (b, h, i, 0)),
            ),
        ),
        compiler_params=pltpu.CompilerParams(
            dimension_semantics=("parallel", "parallel", "parallel"),
            vmem_limit_bytes=_vmem_limit(tile_bytes),
        ),
    )(qh, kh, vh, pos_bias_scaled, neg_mask)
    return att, ctx


# ----------------------------------------------------------------------------
# relative-position buckets (T5-style, exactly as in the PyTorch module)
# layer-invariant: computed once per forward
# ----------------------------------------------------------------------------
def relative_position_buckets(seq_len):
    num_buckets = 16
    max_distance = 16          # self.max_distance in the module
    ctx = jnp.arange(seq_len, dtype=jnp.int32)[:, None]
    mem = jnp.arange(seq_len, dtype=jnp.int32)[None, :]
    rel = mem - ctx
    relp = -jnp.minimum(rel, 0)                       # non-negative distance
    max_exact = num_buckets // 2
    is_small = relp < max_exact
    relp_f = jnp.maximum(relp.astype(jnp.float32), 1.0)   # guard log(0); masked
    large = (jnp.log(relp_f / max_exact) / math.log(max_distance / max_exact)
             * (num_buckets - max_exact)).astype(jnp.int32)
    large = jnp.minimum(max_exact + large, num_buckets - 1)
    buckets = jnp.where(is_small, relp, large)
    buckets = buckets.T + buckets
    rp_mask = (buckets == max_distance - 1).astype(jnp.float32)   # (S, S)
    return buckets, rp_mask


def position_bias(rel_emb, buckets):
    values = jnp.take(rel_emb, buckets, axis=0)       # (S, S, H)
    return jnp.transpose(values, (2, 0, 1))[None]     # (1, H, S, S)


# ----------------------------------------------------------------------------
# full encoder forward (Pallas kernels)
# ----------------------------------------------------------------------------
@functools.partial(jax.jit, static_argnames=("num_heads",))
def encoder_forward(h, mask, params, *, num_heads):
    B, S, E = h.shape
    d = E // num_heads
    scale = 1.0 / math.sqrt(d)
    atts = []

    buckets, rp_mask = relative_position_buckets(S)
    # layer-invariant additive mask term (B, 1, S, S); never broadcast to H
    neg_mask = ((mask + rp_mask[None, None]) * (-1e9)).astype(jnp.float32)

    def split_heads(t):
        return t.reshape(B, S, num_heads, d).transpose(0, 2, 1, 3)

    for p in params:
        # fused QKV projection: one HBM pass over h, one kernel launch
        w_qkv = jnp.concatenate([p["wq"], p["wk"], p["wv"]], axis=1)
        b_qkv = jnp.concatenate([p["bq"], p["bk"], p["bv"]], axis=0)
        qkv = pallas_linear(h, w_qkv, b_qkv, out_dtype=jnp.bfloat16)
        q, k, v = qkv[..., :E], qkv[..., E:2 * E], qkv[..., 2 * E:]
        qh, kh, vh = split_heads(q), split_heads(k), split_heads(v)
        # TODO(synk): slice heads inside the attention kernel (needs d % 128 == 0)
        # to remove these XLA head-split/merge transposes entirely.

        pb = (position_bias(p["rel_emb"], buckets) * scale).astype(jnp.float32)

        att, ctx = pallas_attention(qh, kh, vh, pb, neg_mask, scale=scale)
        ctx = ctx.transpose(0, 2, 1, 3).reshape(B, S, E)

        # out-projection fused with residual-add + LayerNorm (dropout = identity)
        a = pallas_linear_add_ln(ctx, p["wo"], p["bo"], h,
                                 p["ln1_g"], p["ln1_b"], eps=1e-6)
        inter = pallas_linear(a, p["wi"], p["bi"], relu=True,
                              out_dtype=jnp.bfloat16)        # Intermediate
        h = pallas_linear_add_ln(inter, p["wd"], p["bd"], a,
                                 p["ln2_g"], p["ln2_b"], eps=1e-6)  # Output

        atts.append(att)
    return h, atts


# ----------------------------------------------------------------------------
# pure-JAX reference (same bf16 casts so tolerances stay tight)
# ----------------------------------------------------------------------------
def _ref_linear(x, w_t, b, relu=False, out_dtype=jnp.float32):
    y = jnp.dot(x.astype(jnp.bfloat16), w_t.astype(jnp.bfloat16),
                preferred_element_type=jnp.float32) + b
    if relu:
        y = jnp.maximum(y, 0.0)
    return y.astype(out_dtype)


def _ref_add_layernorm(x, residual, gamma, beta, eps=1e-6):
    s = x + residual
    mean = jnp.mean(s, axis=-1, keepdims=True)
    c = s - mean
    var = jnp.mean(c * c, axis=-1, keepdims=True)
    return c * jax.lax.rsqrt(var + eps) * gamma + beta


def _ref_encoder(h, mask, params, num_heads):
    B, S, E = h.shape
    d = E // num_heads
    scale = 1.0 / math.sqrt(d)
    buckets, rp_mask = relative_position_buckets(S)
    atts = []
    for p in params:
        w_qkv = jnp.concatenate([p["wq"], p["wk"], p["wv"]], axis=1)
        b_qkv = jnp.concatenate([p["bq"], p["bk"], p["bv"]], axis=0)
        qkv = _ref_linear(h, w_qkv, b_qkv, out_dtype=jnp.bfloat16)
        q, k, v = qkv[..., :E], qkv[..., E:2 * E], qkv[..., 2 * E:]

        def split(t):
            return t.reshape(B, S, num_heads, d).transpose(0, 2, 1, 3)

        qh, kh, vh = split(q), split(k), split(v)
        pos = position_bias(p["rel_emb"], buckets)
        qk = jnp.einsum("bhqd,bhkd->bhqk", qh, kh,
                        preferred_element_type=jnp.float32)
        logits = (qk + pos) * scale
        logits = logits + mask * (-1e9) + rp_mask[None, None] * (-1e9)
        w = jax.nn.softmax(logits, axis=-1)
        ctx = jnp.einsum("bhqk,bhkd->bhqd", w.astype(jnp.bfloat16), vh,
                         preferred_element_type=jnp.float32)
        ctx = ctx.astype(jnp.bfloat16).transpose(0, 2, 1, 3).reshape(B, S, E)

        attn_out = _ref_linear(ctx, p["wo"], p["bo"])
        a = _ref_add_layernorm(attn_out, h, p["ln1_g"], p["ln1_b"])
        inter = _ref_linear(a, p["wi"], p["bi"], relu=True, out_dtype=jnp.bfloat16)
        dense = _ref_linear(inter, p["wd"], p["bd"])
        h = _ref_add_layernorm(dense, a, p["ln2_g"], p["ln2_b"])
        atts.append(logits)
    return h, atts


# ----------------------------------------------------------------------------
# parameter init (deterministic, nn.Linear-style uniform; Embedding ~ normal)
# ----------------------------------------------------------------------------
def init_params(key, num_layers, embed_size, intermediate_size, num_heads):
    params = []

    def lin(k, fan_in, fan_out):
        bound = 1.0 / math.sqrt(fan_in)
        kw, kb = jax.random.split(k)
        w = jax.random.uniform(kw, (fan_in, fan_out), jnp.float32, -bound, bound)
        b = jax.random.uniform(kb, (fan_out,), jnp.float32, -bound, bound)
        return w, b

    for _ in range(num_layers):
        key, *ks = jax.random.split(key, 9)
        wq, bq = lin(ks[0], embed_size, embed_size)
        wk, bk = lin(ks[1], embed_size, embed_size)
        wv, bv = lin(ks[2], embed_size, embed_size)
        wo, bo = lin(ks[3], embed_size, embed_size)
        wi, bi = lin(ks[4], embed_size, intermediate_size)
        wd, bd = lin(ks[5], intermediate_size, embed_size)
        rel_emb = jax.random.normal(ks[6], (16, num_heads), jnp.float32)
        params.append(dict(
            wq=wq, bq=bq, wk=wk, bk=bk, wv=wv, bv=bv, wo=wo, bo=bo,
            wi=wi, bi=bi, wd=wd, bd=bd, rel_emb=rel_emb,
            ln1_g=jnp.ones((embed_size,), jnp.float32),
            ln1_b=jnp.zeros((embed_size,), jnp.float32),
            ln2_g=jnp.ones((embed_size,), jnp.float32),
            ln2_b=jnp.zeros((embed_size,), jnp.float32),
        ))
    return params


if __name__ == "__main__":
    num_layers, embed_size, hidden_size, num_heads = 2, 32, 64, 4
    batch, seq = 2, 8

    key = jax.random.PRNGKey(0)
    kx, kp = jax.random.split(key, 2)
    h = jax.random.normal(kx, (batch, seq, embed_size), dtype=jnp.float32)
    # additive 0/1 mask broadcastable to (B, H, S, S); mask last key of batch 1
    mask = jnp.zeros((batch, 1, 1, seq), jnp.float32).at[1, 0, 0, -1].set(1.0)
    params = init_params(kp, num_layers, embed_size, hidden_size, num_heads)

    out, atts = encoder_forward(h, mask, params, num_heads=num_heads)
    out = jax.block_until_ready(out)

    ref_out, ref_atts = _ref_encoder(h, mask, params, num_heads)

    assert out.shape == (batch, seq, embed_size), out.shape
    assert len(atts) == num_layers
    assert atts[0].shape == (batch, num_heads, seq, seq), atts[0].shape
    assert jnp.allclose(out, ref_out, atol=1e-2, rtol=1e-2), \
        float(jnp.max(jnp.abs(out - ref_out)))
    for a, ra in zip(atts, ref_atts):
        assert jnp.allclose(a, ra, atol=1e-2, rtol=1e-2), \
            float(jnp.max(jnp.abs(a - ra)))

    print("KERNEL_OK")
</pallas_src>

<mosaic_0001>
module attributes {stable_mosaic.version = 11 : i64} {
  func.func @_linear_kernel(%arg0: i32, %arg1: i32, %arg2: memref<16x32xbf16, #tpu.memory_space<vmem>>, %arg3: memref<32x128xbf16, #tpu.memory_space<vmem>>, %arg4: memref<1x128xf32, #tpu.memory_space<vmem>>, %arg5: memref<16x128xbf16, #tpu.memory_space<vmem>>) attributes {dimension_semantics = [#tpu.dimension_semantics<parallel>, #tpu.dimension_semantics<parallel>], iteration_bounds = array<i64: 1, 1>, scalar_prefetch = 0 : i64, scratch_operands = 0 : i64, tpu.core_type = #tpu.core_type<tc>, window_params = [{transform_indices = @transform_0, window_bounds = array<i64: 16, 32>}, {transform_indices = @transform_1, window_bounds = array<i64: 32, 128>}, {transform_indices = @transform_2, window_bounds = array<i64: 1, 128>}, {transform_indices = @transform_3, window_bounds = array<i64: 16, 128>}]} {
    %c0 = arith.constant 0 : index
    %c0_0 = arith.constant 0 : index
    %0 = vector.load %arg2[%c0, %c0_0] : memref<16x32xbf16, #tpu.memory_space<vmem>>, vector<16x32xbf16>
    %c0_1 = arith.constant 0 : index
    %c0_2 = arith.constant 0 : index
    %1 = vector.load %arg3[%c0_1, %c0_2] : memref<32x128xbf16, #tpu.memory_space<vmem>>, vector<32x128xbf16>
    %cst = arith.constant dense<0.000000e+00> : vector<16x128xf32>
    %2 = tpu.matmul %0, %1, %cst {dimension_numbers = #tpu.dot_dimension_numbers<[1], [0], [0], [1], [0, 0, 1, 1], [], []>} : vector<16x32xbf16>, vector<32x128xbf16>, vector<16x128xf32> -> vector<16x128xf32>
    %c0_3 = arith.constant 0 : index
    %c0_4 = arith.constant 0 : index
    %3 = vector.load %arg4[%c0_3, %c0_4] : memref<1x128xf32, #tpu.memory_space<vmem>>, vector<1x128xf32>
    %4 = vector.broadcast %3 : vector<1x128xf32> to vector<16x128xf32>
    %5 = arith.addf %2, %4 : vector<16x128xf32>
    %6 = arith.truncf %5 : vector<16x128xf32> to vector<16x128xbf16>
    %c0_5 = arith.constant 0 : index
    %c0_6 = arith.constant 0 : index
    %7 = vector.load %arg5[%c0_5, %c0_6] : memref<16x128xbf16, #tpu.memory_space<vmem>>, vector<16x128xbf16>
    tpu.vector_store %arg5[%c0_5, %c0_6], %6 {strides = array<i32>} : memref<16x128xbf16, #tpu.memory_space<vmem>>, vector<16x128xbf16>,
    return
  }
  func.func @transform_0(%arg0: i32, %arg1: i32) -> (i32, i32) {
    %c0_i32 = arith.constant 0 : i32
    %c0_i32_0 = arith.constant 0 : i32
    return %arg1, %c0_i32 : i32, i32
  }
  func.func @transform_1(%arg0: i32, %arg1: i32) -> (i32, i32) {
    %c0_i32 = arith.constant 0 : i32
    %c0_i32_0 = arith.constant 0 : i32
    return %c0_i32, %arg0 : i32, i32
  }
  func.func @transform_2(%arg0: i32, %arg1: i32) -> (i32, i32) {
    %c0_i32 = arith.constant 0 : i32
    %c0_i32_0 = arith.constant 0 : i32
    return %c0_i32, %arg0 : i32, i32
  }
  func.func @transform_3(%arg0: i32, %arg1: i32) -> (i32, i32) {
    %c0_i32 = arith.constant 0 : i32
    return %arg1, %arg0 : i32, i32
  }
}

module attributes {stable_mosaic.version = 11 : i64} {
  func.func @_attn_kernel(%arg0: i32, %arg1: i32, %arg2: i32, %arg3: memref<1x1x8x8xbf16, #tpu.memory_space<vmem>>, %arg4: memref<1x1x8x8xbf16, #tpu.memory_space<vmem>>, %arg5: memref<1x1x8x8xbf16, #tpu.memory_space<vmem>>, %arg6: memref<1x1x8x8xf32, #tpu.memory_space<vmem>>, %arg7: memref<1x1x8x8xf32, #tpu.memory_space<vmem>>, %arg8: memref<1x1x8x8xf32, #tpu.memory_space<vmem>>, %arg9: memref<1x1x8x8xbf16, #tpu.memory_space<vmem>>) attributes {dimension_semantics = [#tpu.dimension_semantics<parallel>, #tpu.dimension_semantics<parallel>, #tpu.dimension_semantics<parallel>], iteration_bounds = array<i64: 2, 4, 1>, scalar_prefetch = 0 : i64, scratch_operands = 0 : i64, tpu.core_type = #tpu.core_type<tc>, window_params = [{transform_indices = @transform_0, window_bounds = array<i64: 1, 1, 8, 8>}, {transform_indices = @transform_1, window_bounds = array<i64: 1, 1, 8, 8>}, {transform_indices = @transform_2, window_bounds = array<i64: 1, 1, 8, 8>}, {transform_indices = @transform_3, window_bounds = array<i64: 1, 1, 8, 8>}, {transform_indices = @transform_4, window_bounds = array<i64: 1, 1, 8, 8>}, {transform_indices = @transform_5, window_bounds = array<i64: 1, 1, 8, 8>}, {transform_indices = @transform_6, window_bounds = array<i64: 1, 1, 8, 8>}]} {
    %c0 = arith.constant 0 : index
    %c0_0 = arith.constant 0 : index
    %c0_1 = arith.constant 0 : index
    %c0_2 = arith.constant 0 : index
    %0 = vector.load %arg3[%c0, %c0_0, %c0_1, %c0_2] : memref<1x1x8x8xbf16, #tpu.memory_space<vmem>>, vector<1x1x8x8xbf16>
    %1 = vector.shape_cast %0 : vector<1x1x8x8xbf16> to vector<8x8xbf16>
    %c0_3 = arith.constant 0 : index
    %c0_4 = arith.constant 0 : index
    %c0_5 = arith.constant 0 : index
    %c0_6 = arith.constant 0 : index
    %2 = vector.load %arg4[%c0_3, %c0_4, %c0_5, %c0_6] : memref<1x1x8x8xbf16, #tpu.memory_space<vmem>>, vector<1x1x8x8xbf16>
    %3 = vector.shape_cast %2 : vector<1x1x8x8xbf16> to vector<8x8xbf16>
    %c0_7 = arith.constant 0 : index
    %c0_8 = arith.constant 0 : index
    %c0_9 = arith.constant 0 : index
    %c0_10 = arith.constant 0 : index
    %4 = vector.load %arg5[%c0_7, %c0_8, %c0_9, %c0_10] : memref<1x1x8x8xbf16, #tpu.memory_space<vmem>>, vector<1x1x8x8xbf16>
    %5 = vector.shape_cast %4 : vector<1x1x8x8xbf16> to vector<8x8xbf16>
    %cst = arith.constant dense<0.000000e+00> : vector<8x8xf32>
    %6 = tpu.matmul %1, %3, %cst {dimension_numbers = #tpu.dot_dimension_numbers<[1], [1], [0], [0], [0, 0, 1, 0], [], []>} : vector<8x8xbf16>, vector<8x8xbf16>, vector<8x8xf32> -> vector<8x8xf32>
    %cst_11 = arith.constant 0.353553385 : f32
    %7 = vector.broadcast %cst_11 : f32 to vector<8x8xf32>
    %8 = arith.mulf %6, %7 : vector<8x8xf32>
    %c0_12 = arith.constant 0 : index
    %c0_13 = arith.constant 0 : index
    %c0_14 = arith.constant 0 : index
    %c0_15 = arith.constant 0 : index
    %9 = vector.load %arg6[%c0_12, %c0_13, %c0_14, %c0_15] : memref<1x1x8x8xf32, #tpu.memory_space<vmem>>, vector<1x1x8x8xf32>
    %10 = vector.shape_cast %9 : vector<1x1x8x8xf32> to vector<8x8xf32>
    %11 = arith.addf %8, %10 : vector<8x8xf32>
    %c0_16 = arith.constant 0 : index
    %c0_17 = arith.constant 0 : index
    %c0_18 = arith.constant 0 : index
    %c0_19 = arith.constant 0 : index
    %12 = vector.load %arg7[%c0_16, %c0_17, %c0_18, %c0_19] : memref<1x1x8x8xf32, #tpu.memory_space<vmem>>, vector<1x1x8x8xf32>
    %13 = vector.shape_cast %12 : vector<1x1x8x8xf32> to vector<8x8xf32>
    %14 = arith.addf %11, %13 : vector<8x8xf32>
    %c0_20 = arith.constant 0 : index
    %c0_21 = arith.constant 0 : index
    %c0_22 = arith.constant 0 : index
    %c0_23 = arith.constant 0 : index
    %15 = vector.load %arg8[%c0_20, %c0_21, %c0_22, %c0_23] : memref<1x1x8x8xf32, #tpu.memory_space<vmem>>, vector<1x1x8x8xf32>
    %16 = vector.shape_cast %15 : vector<1x1x8x8xf32> to vector<8x8xf32>
    %17 = vector.shape_cast %14 : vector<8x8xf32> to vector<1x1x8x8xf32>
    tpu.vector_store %arg8[%c0_20, %c0_21, %c0_22, %c0_23], %17 {strides = array<i32>} : memref<1x1x8x8xf32, #tpu.memory_space<vmem>>, vector<1x1x8x8xf32>,
    %cst_24 = arith.constant dense<0xFF800000> : vector<8xf32>
    %18 = vector.multi_reduction <maximumf>, %14, %cst_24 [1] : vector<8x8xf32> to vector<8xf32>
    %19 = vector.shape_cast %18 : vector<8xf32> to vector<8x1xf32>
    %20 = vector.broadcast %19 : vector<8x1xf32> to vector<8x8xf32>
    %21 = arith.subf %14, %20 : vector<8x8xf32>
    %22 = math.exp %21 : vector<8x8xf32>
    %cst_25 = arith.constant dense<0.000000e+00> : vector<8xf32>
    %23 = vector.multi_reduction <add>, %22, %cst_25 [1] : vector<8x8xf32> to vector<8xf32>
    %24 = vector.shape_cast %23 : vector<8xf32> to vector<8x1xf32>
    %25 = tpu.reciprocal %24 {approx = true} : vector<8x1xf32> -> vector<8x1xf32>
    %26 = vector.broadcast %25 : vector<8x1xf32> to vector<8x8xf32>
    %27 = arith.mulf %22, %26 : vector<8x8xf32>
    %28 = arith.truncf %27 : vector<8x8xf32> to vector<8x8xbf16>
    %cst_26 = arith.constant dense<0.000000e+00> : vector<8x8xf32>
    %29 = tpu.matmul %28, %5, %cst_26 {dimension_numbers = #tpu.dot_dimension_numbers<[1], [0], [0], [1], [0, 0, 1, 1], [], []>} : vector<8x8xbf16>, vector<8x8xbf16>, vector<8x8xf32> -> vector<8x8xf32>
    %30 = arith.truncf %29 : vector<8x8xf32> to vector<8x8xbf16>
    %c0_27 = arith.constant 0 : index
    %c0_28 = arith.constant 0 : index
    %c0_29 = arith.constant 0 : index
    %c0_30 = arith.constant 0 : index
    %31 = vector.load %arg9[%c0_27, %c0_28, %c0_29, %c0_30] : memref<1x1x8x8xbf16, #tpu.memory_space<vmem>>, vector<1x1x8x8xbf16>
    %32 = vector.shape_cast %31 : vector<1x1x8x8xbf16> to vector<8x8xbf16>
    %33 = vector.shape_cast %30 : vector<8x8xbf16> to vector<1x1x8x8xbf16>
    tpu.vector_store %arg9[%c0_27, %c0_28, %c0_29, %c0_30], %33 {strides = array<i32>} : memref<1x1x8x8xbf16, #tpu.memory_space<vmem>>, vector<1x1x8x8xbf16>,
    return
  }
  func.func @transform_0(%arg0: i32, %arg1: i32, %arg2: i32) -> (i32, i32, i32, i32) {
    %c0_i32 = arith.constant 0 : i32
    %c0_i32_0 = arith.constant 0 : i32
    return %arg0, %arg1, %arg2, %c0_i32 : i32, i32, i32, i32
  }
  func.func @transform_1(%arg0: i32, %arg1: i32, %arg2: i32) -> (i32, i32, i32, i32) {
    %c0_i32 = arith.constant 0 : i32
    %c0_i32_0 = arith.constant 0 : i32
    %c0_i32_1 = arith.constant 0 : i32
    return %arg0, %arg1, %c0_i32, %c0_i32_0 : i32, i32, i32, i32
  }
  func.func @transform_2(%arg0: i32, %arg1: i32, %arg2: i32) -> (i32, i32, i32, i32) {
    %c0_i32 = arith.constant 0 : i32
    %c0_i32_0 = arith.constant 0 : i32
    %c0_i32_1 = arith.constant 0 : i32
    return %arg0, %arg1, %c0_i32, %c0_i32_0 : i32, i32, i32, i32
  }
  func.func @transform_3(%arg0: i32, %arg1: i32, %arg2: i32) -> (i32, i32, i32, i32) {
    %c0_i32 = arith.constant 0 : i32
    %c0_i32_0 = arith.constant 0 : i32
    %c0_i32_1 = arith.constant 0 : i32
    return %c0_i32, %arg1, %arg2, %c0_i32_0 : i32, i32, i32, i32
  }
  func.func @transform_4(%arg0: i32, %arg1: i32, %arg2: i32) -> (i32, i32, i32, i32) {
    %c0_i32 = arith.constant 0 : i32
    %c0_i32_0 = arith.constant 0 : i32
    %c0_i32_1 = arith.constant 0 : i32
    return %arg0, %c0_i32, %arg2, %c0_i32_0 : i32, i32, i32, i32
  }
  func.func @transform_5(%arg0: i32, %arg1: i32, %arg2: i32) -> (i32, i32, i32, i32) {
    %c0_i32 = arith.constant 0 : i32
    %c0_i32_0 = arith.constant 0 : i32
    return %arg0, %arg1, %arg2, %c0_i32 : i32, i32, i32, i32
  }
  func.func @transform_6(%arg0: i32, %arg1: i32, %arg2: i32) -> (i32, i32, i32, i32) {
    %c0_i32 = arith.constant 0 : i32
    %c0_i32_0 = arith.constant 0 : i32
    return %arg0, %arg1, %arg2, %c0_i32 : i32, i32, i32, i32
  }
}

module attributes {stable_mosaic.version = 11 : i64} {
  func.func @_linear_add_ln_kernel(%arg0: i32, %arg1: memref<16x32xbf16, #tpu.memory_space<vmem>>, %arg2: memref<32x128xbf16, #tpu.memory_space<vmem>>, %arg3: memref<1x128xf32, #tpu.memory_space<vmem>>, %arg4: memref<16x128xf32, #tpu.memory_space<vmem>>, %arg5: memref<1x128xf32, #tpu.memory_space<vmem>>, %arg6: memref<1x128xf32, #tpu.memory_space<vmem>>, %arg7: memref<16x128xf32, #tpu.memory_space<vmem>>) attributes {dimension_semantics = [#tpu.dimension_semantics<parallel>], iteration_bounds = array<i64: 1>, scalar_prefetch = 0 : i64, scratch_operands = 0 : i64, tpu.core_type = #tpu.core_type<tc>, window_params = [{transform_indices = @transform_0, window_bounds = array<i64: 16, 32>}, {pipeline_mode = #tpu.pipeline_mode<synchronous>, transform_indices = @transform_1, window_bounds = array<i64: 32, 128>}, {pipeline_mode = #tpu.pipeline_mode<synchronous>, transform_indices = @transform_2, window_bounds = array<i64: 1, 128>}, {transform_indices = @transform_3, window_bounds = array<i64: 16, 128>}, {pipeline_mode = #tpu.pipeline_mode<synchronous>, transform_indices = @transform_4, window_bounds = array<i64: 1, 128>}, {pipeline_mode = #tpu.pipeline_mode<synchronous>, transform_indices = @transform_5, window_bounds = array<i64: 1, 128>}, {transform_indices = @transform_6, window_bounds = array<i64: 16, 128>}]} {
    %c0 = arith.constant 0 : index
    %c0_0 = arith.constant 0 : index
    %0 = vector.load %arg1[%c0, %c0_0] : memref<16x32xbf16, #tpu.memory_space<vmem>>, vector<16x32xbf16>
    %c0_1 = arith.constant 0 : index
    %c0_2 = arith.constant 0 : index
    %1 = vector.load %arg2[%c0_1, %c0_2] : memref<32x128xbf16, #tpu.memory_space<vmem>>, vector<32x128xbf16>
    %cst = arith.constant dense<0.000000e+00> : vector<16x128xf32>
    %2 = tpu.matmul %0, %1, %cst {dimension_numbers = #tpu.dot_dimension_numbers<[1], [0], [0], [1], [0, 0, 1, 1], [], []>} : vector<16x32xbf16>, vector<32x128xbf16>, vector<16x128xf32> -> vector<16x128xf32>
    %c0_3 = arith.constant 0 : index
    %c0_4 = arith.constant 0 : index
    %3 = vector.load %arg3[%c0_3, %c0_4] : memref<1x128xf32, #tpu.memory_space<vmem>>, vector<1x128xf32>
    %4 = vector.broadcast %3 : vector<1x128xf32> to vector<16x128xf32>
    %5 = arith.addf %2, %4 : vector<16x128xf32>
    %c0_5 = arith.constant 0 : index
    %c0_6 = arith.constant 0 : index
    %6 = vector.load %arg4[%c0_5, %c0_6] : memref<16x128xf32, #tpu.memory_space<vmem>>, vector<16x128xf32>
    %7 = arith.addf %5, %6 : vector<16x128xf32>
    %cst_7 = arith.constant dense<0.000000e+00> : vector<16xf32>
    %8 = vector.multi_reduction <add>, %7, %cst_7 [1] : vector<16x128xf32> to vector<16xf32>
    %9 = vector.shape_cast %8 : vector<16xf32> to vector<16x1xf32>
    %cst_8 = arith.constant 3.125000e-02 : f32
    %10 = vector.broadcast %cst_8 : f32 to vector<16x1xf32>
    %11 = arith.mulf %9, %10 : vector<16x1xf32>
    %12 = arith.mulf %7, %7 : vector<16x128xf32>
    %cst_9 = arith.constant dense<0.000000e+00> : vector<16xf32>
    %13 = vector.multi_reduction <add>, %12, %cst_9 [1] : vector<16x128xf32> to vector<16xf32>
    %14 = vector.shape_cast %13 : vector<16xf32> to vector<16x1xf32>
    %cst_10 = arith.constant 3.125000e-02 : f32
    %15 = vector.broadcast %cst_10 : f32 to vector<16x1xf32>
    %16 = arith.mulf %14, %15 : vector<16x1xf32>
    %17 = arith.mulf %11, %11 : vector<16x1xf32>
    %18 = arith.subf %16, %17 : vector<16x1xf32>
    %19 = vector.broadcast %11 : vector<16x1xf32> to vector<16x128xf32>
    %20 = arith.subf %7, %19 : vector<16x128xf32>
    %cst_11 = arith.constant 9.99999997E-7 : f32
    %21 = vector.broadcast %cst_11 : f32 to vector<16x1xf32>
    %22 = arith.addf %18, %21 : vector<16x1xf32>
    %23 = math.rsqrt %22 : vector<16x1xf32>
    %24 = vector.broadcast %23 : vector<16x1xf32> to vector<16x128xf32>
    %25 = arith.mulf %20, %24 : vector<16x128xf32>
    %c0_12 = arith.constant 0 : index
    %c0_13 = arith.constant 0 : index
    %26 = vector.load %arg5[%c0_12, %c0_13] : memref<1x128xf32, #tpu.memory_space<vmem>>, vector<1x128xf32>
    %27 = vector.broadcast %26 : vector<1x128xf32> to vector<16x128xf32>
    %28 = arith.mulf %25, %27 : vector<16x128xf32>
    %c0_14 = arith.constant 0 : index
    %c0_15 = arith.constant 0 : index
    %29 = vector.load %arg6[%c0_14, %c0_15] : memref<1x128xf32, #tpu.memory_space<vmem>>, vector<1x128xf32>
    %30 = vector.broadcast %29 : vector<1x128xf32> to vector<16x128xf32>
    %31 = arith.addf %28, %30 : vector<16x128xf32>
    %c0_16 = arith.constant 0 : index
    %c0_17 = arith.constant 0 : index
    %32 = vector.load %arg7[%c0_16, %c0_17] : memref<16x128xf32, #tpu.memory_space<vmem>>, vector<16x128xf32>
    tpu.vector_store %arg7[%c0_16, %c0_17], %31 {strides = array<i32>} : memref<16x128xf32, #tpu.memory_space<vmem>>, vector<16x128xf32>,
    return
  }
  func.func @transform_0(%arg0: i32) -> (i32, i32) {
    %c0_i32 = arith.constant 0 : i32
    %c0_i32_0 = arith.constant 0 : i32
    return %arg0, %c0_i32 : i32, i32
  }
  func.func @transform_1(%arg0: i32) -> (i32, i32) {
    %c0_i32 = arith.constant 0 : i32
    %c0_i32_0 = arith.constant 0 : i32
    %c0_i32_1 = arith.constant 0 : i32
    return %c0_i32, %c0_i32_0 : i32, i32
  }
  func.func @transform_2(%arg0: i32) -> (i32, i32) {
    %c0_i32 = arith.constant 0 : i32
    %c0_i32_0 = arith.constant 0 : i32
    %c0_i32_1 = arith.constant 0 : i32
    return %c0_i32, %c0_i32_0 : i32, i32
  }
  func.func @transform_3(%arg0: i32) -> (i32, i32) {
    %c0_i32 = arith.constant 0 : i32
    %c0_i32_0 = arith.constant 0 : i32
    return %arg0, %c0_i32 : i32, i32
  }
  func.func @transform_4(%arg0: i32) -> (i32, i32) {
    %c0_i32 = arith.constant 0 : i32
    %c0_i32_0 = arith.constant 0 : i32
    %c0_i32_1 = arith.constant 0 : i32
    return %c0_i32, %c0_i32_0 : i32, i32
  }
  func.func @transform_5(%arg0: i32) -> (i32, i32) {
    %c0_i32 = arith.constant 0 : i32
    %c0_i32_0 = arith.constant 0 : i32
    %c0_i32_1 = arith.constant 0 : i32
    return %c0_i32, %c0_i32_0 : i32, i32
  }
  func.func @transform_6(%arg0: i32) -> (i32, i32) {
    %c0_i32 = arith.constant 0 : i32
    %c0_i32_0 = arith.constant 0 : i32
    return %arg0, %c0_i32 : i32, i32
  }
}

module attributes {stable_mosaic.version = 11 : i64} {
  func.func @_linear_kernel(%arg0: i32, %arg1: i32, %arg2: memref<16x32xbf16, #tpu.memory_space<vmem>>, %arg3: memref<32x128xbf16, #tpu.memory_space<vmem>>, %arg4: memref<1x128xf32, #tpu.memory_space<vmem>>, %arg5: memref<16x128xbf16, #tpu.memory_space<vmem>>) attributes {dimension_semantics = [#tpu.dimension_semantics<parallel>, #tpu.dimension_semantics<parallel>], iteration_bounds = array<i64: 1, 1>, scalar_prefetch = 0 : i64, scratch_operands = 0 : i64, tpu.core_type = #tpu.core_type<tc>, window_params = [{transform_indices = @transform_0, window_bounds = array<i64: 16, 32>}, {transform_indices = @transform_1, window_bounds = array<i64: 32, 128>}, {transform_indices = @transform_2, window_bounds = array<i64: 1, 128>}, {transform_indices = @transform_3, window_bounds = array<i64: 16, 128>}]} {
    %c0 = arith.constant 0 : index
    %c0_0 = arith.constant 0 : index
    %0 = vector.load %arg2[%c0, %c0_0] : memref<16x32xbf16, #tpu.memory_space<vmem>>, vector<16x32xbf16>
    %c0_1 = arith.constant 0 : index
    %c0_2 = arith.constant 0 : index
    %1 = vector.load %arg3[%c0_1, %c0_2] : memref<32x128xbf16, #tpu.memory_space<vmem>>, vector<32x128xbf16>
    %cst = arith.constant dense<0.000000e+00> : vector<16x128xf32>
    %2 = tpu.matmul %0, %1, %cst {dimension_numbers = #tpu.dot_dimension_numbers<[1], [0], [0], [1], [0, 0, 1, 1], [], []>} : vector<16x32xbf16>, vector<32x128xbf16>, vector<16x128xf32> -> vector<16x128xf32>
    %c0_3 = arith.constant 0 : index
    %c0_4 = arith.constant 0 : index
    %3 = vector.load %arg4[%c0_3, %c0_4] : memref<1x128xf32, #tpu.memory_space<vmem>>, vector<1x128xf32>
    %4 = vector.broadcast %3 : vector<1x128xf32> to vector<16x128xf32>
    %5 = arith.addf %2, %4 : vector<16x128xf32>
    %cst_5 = arith.constant 0.000000e+00 : f32
    %6 = vector.broadcast %cst_5 : f32 to vector<16x128xf32>
    %7 = arith.maximumf %5, %6 : vector<16x128xf32>
    %8 = arith.truncf %7 : vector<16x128xf32> to vector<16x128xbf16>
    %c0_6 = arith.constant 0 : index
    %c0_7 = arith.constant 0 : index
    %9 = vector.load %arg5[%c0_6, %c0_7] : memref<16x128xbf16, #tpu.memory_space<vmem>>, vector<16x128xbf16>
    tpu.vector_store %arg5[%c0_6, %c0_7], %8 {strides = array<i32>} : memref<16x128xbf16, #tpu.memory_space<vmem>>, vector<16x128xbf16>,
    return
  }
  func.func @transform_0(%arg0: i32, %arg1: i32) -> (i32, i32) {
    %c0_i32 = arith.constant 0 : i32
    %c0_i32_0 = arith.constant 0 : i32
    return %arg1, %c0_i32 : i32, i32
  }
  func.func @transform_1(%arg0: i32, %arg1: i32) -> (i32, i32) {
    %c0_i32 = arith.constant 0 : i32
    %c0_i32_0 = arith.constant 0 : i32
    return %c0_i32, %arg0 : i32, i32
  }
  func.func @transform_2(%arg0: i32, %arg1: i32) -> (i32, i32) {
    %c0_i32 = arith.constant 0 : i32
    %c0_i32_0 = arith.constant 0 : i32
    return %c0_i32, %arg0 : i32, i32
  }
  func.func @transform_3(%arg0: i32, %arg1: i32) -> (i32, i32) {
    %c0_i32 = arith.constant 0 : i32
    return %arg1, %arg0 : i32, i32
  }
}

module attributes {stable_mosaic.version = 11 : i64} {
  func.func @_linear_add_ln_kernel(%arg0: i32, %arg1: memref<16x64xbf16, #tpu.memory_space<vmem>>, %arg2: memref<64x128xbf16, #tpu.memory_space<vmem>>, %arg3: memref<1x128xf32, #tpu.memory_space<vmem>>, %arg4: memref<16x128xf32, #tpu.memory_space<vmem>>, %arg5: memref<1x128xf32, #tpu.memory_space<vmem>>, %arg6: memref<1x128xf32, #tpu.memory_space<vmem>>, %arg7: memref<16x128xf32, #tpu.memory_space<vmem>>) attributes {dimension_semantics = [#tpu.dimension_semantics<parallel>], iteration_bounds = array<i64: 1>, scalar_prefetch = 0 : i64, scratch_operands = 0 : i64, tpu.core_type = #tpu.core_type<tc>, window_params = [{transform_indices = @transform_0, window_bounds = array<i64: 16, 64>}, {pipeline_mode = #tpu.pipeline_mode<synchronous>, transform_indices = @transform_1, window_bounds = array<i64: 64, 128>}, {pipeline_mode = #tpu.pipeline_mode<synchronous>, transform_indices = @transform_2, window_bounds = array<i64: 1, 128>}, {transform_indices = @transform_3, window_bounds = array<i64: 16, 128>}, {pipeline_mode = #tpu.pipeline_mode<synchronous>, transform_indices = @transform_4, window_bounds = array<i64: 1, 128>}, {pipeline_mode = #tpu.pipeline_mode<synchronous>, transform_indices = @transform_5, window_bounds = array<i64: 1, 128>}, {transform_indices = @transform_6, window_bounds = array<i64: 16, 128>}]} {
    %c0 = arith.constant 0 : index
    %c0_0 = arith.constant 0 : index
    %0 = vector.load %arg1[%c0, %c0_0] : memref<16x64xbf16, #tpu.memory_space<vmem>>, vector<16x64xbf16>
    %c0_1 = arith.constant 0 : index
    %c0_2 = arith.constant 0 : index
    %1 = vector.load %arg2[%c0_1, %c0_2] : memref<64x128xbf16, #tpu.memory_space<vmem>>, vector<64x128xbf16>
    %cst = arith.constant dense<0.000000e+00> : vector<16x128xf32>
    %2 = tpu.matmul %0, %1, %cst {dimension_numbers = #tpu.dot_dimension_numbers<[1], [0], [0], [1], [0, 0, 1, 1], [], []>} : vector<16x64xbf16>, vector<64x128xbf16>, vector<16x128xf32> -> vector<16x128xf32>
    %c0_3 = arith.constant 0 : index
    %c0_4 = arith.constant 0 : index
    %3 = vector.load %arg3[%c0_3, %c0_4] : memref<1x128xf32, #tpu.memory_space<vmem>>, vector<1x128xf32>
    %4 = vector.broadcast %3 : vector<1x128xf32> to vector<16x128xf32>
    %5 = arith.addf %2, %4 : vector<16x128xf32>
    %c0_5 = arith.constant 0 : index
    %c0_6 = arith.constant 0 : index
    %6 = vector.load %arg4[%c0_5, %c0_6] : memref<16x128xf32, #tpu.memory_space<vmem>>, vector<16x128xf32>
    %7 = arith.addf %5, %6 : vector<16x128xf32>
    %cst_7 = arith.constant dense<0.000000e+00> : vector<16xf32>
    %8 = vector.multi_reduction <add>, %7, %cst_7 [1] : vector<16x128xf32> to vector<16xf32>
    %9 = vector.shape_cast %8 : vector<16xf32> to vector<16x1xf32>
    %cst_8 = arith.constant 3.125000e-02 : f32
    %10 = vector.broadcast %cst_8 : f32 to vector<16x1xf32>
    %11 = arith.mulf %9, %10 : vector<16x1xf32>
    %12 = arith.mulf %7, %7 : vector<16x128xf32>
    %cst_9 = arith.constant dense<0.000000e+00> : vector<16xf32>
    %13 = vector.multi_reduction <add>, %12, %cst_9 [1] : vector<16x128xf32> to vector<16xf32>
    %14 = vector.shape_cast %13 : vector<16xf32> to vector<16x1xf32>
    %cst_10 = arith.constant 3.125000e-02 : f32
    %15 = vector.broadcast %cst_10 : f32 to vector<16x1xf32>
    %16 = arith.mulf %14, %15 : vector<16x1xf32>
    %17 = arith.mulf %11, %11 : vector<16x1xf32>
    %18 = arith.subf %16, %17 : vector<16x1xf32>
    %19 = vector.broadcast %11 : vector<16x1xf32> to vector<16x128xf32>
    %20 = arith.subf %7, %19 : vector<16x128xf32>
    %cst_11 = arith.constant 9.99999997E-7 : f32
    %21 = vector.broadcast %cst_11 : f32 to vector<16x1xf32>
    %22 = arith.addf %18, %21 : vector<16x1xf32>
    %23 = math.rsqrt %22 : vector<16x1xf32>
    %24 = vector.broadcast %23 : vector<16x1xf32> to vector<16x128xf32>
    %25 = arith.mulf %20, %24 : vector<16x128xf32>
    %c0_12 = arith.constant 0 : index
    %c0_13 = arith.constant 0 : index
    %26 = vector.load %arg5[%c0_12, %c0_13] : memref<1x128xf32, #tpu.memory_space<vmem>>, vector<1x128xf32>
    %27 = vector.broadcast %26 : vector<1x128xf32> to vector<16x128xf32>
    %28 = arith.mulf %25, %27 : vector<16x128xf32>
    %c0_14 = arith.constant 0 : index
    %c0_15 = arith.constant 0 : index
    %29 = vector.load %arg6[%c0_14, %c0_15] : memref<1x128xf32, #tpu.memory_space<vmem>>, vector<1x128xf32>
    %30 = vector.broadcast %29 : vector<1x128xf32> to vector<16x128xf32>
    %31 = arith.addf %28, %30 : vector<16x128xf32>
    %c0_16 = arith.constant 0 : index
    %c0_17 = arith.constant 0 : index
    %32 = vector.load %arg7[%c0_16, %c0_17] : memref<16x128xf32, #tpu.memory_space<vmem>>, vector<16x128xf32>
    tpu.vector_store %arg7[%c0_16, %c0_17], %31 {strides = array<i32>} : memref<16x128xf32, #tpu.memory_space<vmem>>, vector<16x128xf32>,
    return
  }
  func.func @transform_0(%arg0: i32) -> (i32, i32) {
    %c0_i32 = arith.constant 0 : i32
    %c0_i32_0 = arith.constant 0 : i32
    return %arg0, %c0_i32 : i32, i32
  }
  func.func @transform_1(%arg0: i32) -> (i32, i32) {
    %c0_i32 = arith.constant 0 : i32
    %c0_i32_0 = arith.constant 0 : i32
    %c0_i32_1 = arith.constant 0 : i32
    return %c0_i32, %c0_i32_0 : i32, i32
  }
  func.func @transform_2(%arg0: i32) -> (i32, i32) {
    %c0_i32 = arith.constant 0 : i32
    %c0_i32_0 = arith.constant 0 : i32
    %c0_i32_1 = arith.constant 0 : i32
    return %c0_i32, %c0_i32_0 : i32, i32
  }
  func.func @transform_3(%arg0: i32) -> (i32, i32) {
    %c0_i32 = arith.constant 0 : i32
    %c0_i32_0 = arith.constant 0 : i32
    return %arg0, %c0_i32 : i32, i32
  }
  func.func @transform_4(%arg0: i32) -> (i32, i32) {
    %c0_i32 = arith.constant 0 : i32
    %c0_i32_0 = arith.constant 0 : i32
    %c0_i32_1 = arith.constant 0 : i32
    return %c0_i32, %c0_i32_0 : i32, i32
  }
  func.func @transform_5(%arg0: i32) -> (i32, i32) {
    %c0_i32 = arith.constant 0 : i32
    %c0_i32_0 = arith.constant 0 : i32
    %c0_i32_1 = arith.constant 0 : i32
    return %c0_i32, %c0_i32_0 : i32, i32
  }
  func.func @transform_6(%arg0: i32) -> (i32, i32) {
    %c0_i32 = arith.constant 0 : i32
    %c0_i32_0 = arith.constant 0 : i32
    return %arg0, %c0_i32 : i32, i32
  }
}

</mosaic_0001>

<bundles_post_ra>
// kernel: encoder_forward.10
= control target key start
LH: loop header
LB: loop body
LE: loop exit
PB: predicated region body
PF: predicated region fallthrough
CT: control target
= control target key end

     0   :  { %vm42_vm0 = vcmask 261120   ;;  %s125_s1 = inlined_call_operand.vmem [shape: bf16[32,128], index: 1, kind: input, shape index: {}]   ;;  %s126_s2 = inlined_call_operand.vmem [shape: f32[1,128], index: 2, kind: input, shape index: {}]   ;;  %s127_s0 = inlined_call_operand.vmem [shape: bf16[16,32], index: 0, kind: input, shape index: {}]   ;;  %s128_s3 = inlined_call_operand.vmem [shape: bf16[16,128], index: 3, kind: output, shape index: {}]  }
   0x1   :  { %v83_v0 = vld [vmem:[%s125_s1 + $0x8] sm:$0xff]  ;;  %v82_v1 = vld [vmem:[%s125_s1] sm:$0xff] }
   0x2   :  { %52 = vmatpush.bf16.msra.mxu0 %v83_v0  ;;  %v81_v2 = vld [vmem:[%s127_s0] sm:$0xff] }
   0x3   :  { %v89_v4 = vld [vmem:[%s126_s2] ss:$0 sm:$0xff] }
   0x6   :  { %53 = vmatpush.bf16.msra.mxu0 %v82_v1 }
   0x9   :  { %80 = vmatmul.msk.bf16.vlgmr.msra.gmra.mxu0 %vm42_vm0, %v81_v2 }
  0x86   :  { %v55_v3 = vpop.f32.mrf.mxu0 }
  0x87   :  { %v56_v6 = vadd.f32 %v89_v4, %v55_v3 }
  0x8e   :  { %v57_v5 = vpop.f32.mrf.mxu0 }
  0x8f   :  { %v58_v7 = vadd.f32 %v89_v4, %v57_v5 }
  0x91   :  { %v87_v8 = vpack.c.bf16 %v58_v7, %v56_v6 }
  0x93   :  { %88 = vst [vmem:[%s128_s3] sm:$0xff] %v87_v8  }

// kernel: encoder_forward.11
= control target key start
LH: loop header
LB: loop body
LE: loop exit
PB: predicated region body
PF: predicated region fallthrough
CT: control target
= control target key end

     0   :  { %s1119_s0 = inlined_call_operand.vmem [shape: bf16[2,4,8,8], index: 0, kind: input, shape index: {}]   ;;  %s1120_s1 = inlined_call_operand.vmem [shape: bf16[2,4,8,8], index: 1, kind: input, shape index: {}]   ;;  %s1121_s2 = inlined_call_operand.vmem [shape: bf16[2,4,8,8], index: 2, kind: input, shape index: {}]   ;;  %s1122_s3 = inlined_call_operand.vmem [shape: f32[1,4,8,8], index: 3, kind: input, shape index: {}]   ;;  %s1123_s4 = inlined_call_operand.vmem [shape: f32[2,1,8,8], index: 4, kind: input, shape index: {}]   ;;  %s1124_s5 = inlined_call_operand.hbm [shape: f32[2,4,8,8], index: 5, kind: output, shape index: {0}]   ;;  %s1125_s6 = inlined_call_operand.vmem [shape: bf16[2,4,8,8], index: 6, kind: output, shape index: {1}]  }
   0x1   :  { %1129 = sst [smem:[#allocation8_spill]] %s1120_s1 }
   0x2   :  { %12 = vsyncpa [#allocation3], 0 }
   0x3   :  { %14 = vsyncpa [#allocation3 + $0x1], 0  ;;  %s963_s21 = smov 0   ;;  %s965_s22 = smov 0  }
   0x4   :  { %s967_s23 = smov 0   ;;  %s969_s24 = smov 0  }
   0x5   :  { %s971_s25 = smov 0   ;;  %s973_s26 = smov 0  }
   0x6   :  { %s975_s27 = smov 0   ;;  %s977_s28 = smov 0  }
   0x7 LB: > { %1130 = sst [smem:[#allocation5_spill]] %s922_s27  ;;  %s734_s29 = sadd.s32 4294967295, %s926_s28   ;;  %s926_s28 = sphi %s977_s28, %s20_s28   ;;  %s922_s27 = sphi %s975_s27, %s1138_s27   ;;  %s918_s26 = sphi %s973_s26, %s1143_s26   ;;  %s914_s25 = sphi %s971_s25, %s1136_s25   ;;  %s910_s24 = sphi %s969_s24, %s1142_s24   ;;  %s906_s23 = sphi %s967_s23, %s1141_s23   ;;  %s902_s22 = sphi %s965_s22, %s1140_s22   ;;  %s898_s21 = sphi %s963_s21, %s1139_s21  }
   0x8   : > { %s735_s30 = sadd.s32 4294967294, %s926_s28   ;;  %s35_s7 = sadd.s32 1, %s918_s26 }
   0x9   : > { %p37_p0 = scmp.ge.s32.totalorder %s35_s7, 4  ;;  %s39_s8 = sadd.s32 1, %s922_s27 }
   0xa   : > { %p202_p1 = scmp.ne.s32.totalorder %s906_s23, %s902_s22  ;;  %p203_p2 = scmp.eq.s32.totalorder %s734_s29, 7 }
   0xb   : > { %s1145_s7 = smov (%p37_p0, %s35_s7), 0  ;;  %s1147_s8 = smov (!%p37_p0, %s39_s8), %s922_s27 }
   0xc   : > { %1131 = sst [smem:[#allocation6_spill]] %s1145_s7  ;;  %s186_s9 = ssub.s32 %s918_s26, %s1145_s7 }
   0xd   : > { %p1014_p3 = por %p203_p2, %p202_p1  ;;  %p41_p4 = scmp.ge.s32.totalorder %s1147_s8, 2 }
   0xe   : > { %p208_p5 = scmp.ne.s32.totalorder %s902_s22, %s898_s21  ;;  %p209_p6 = scmp.eq.s32.totalorder %s735_s30, 7 }
   0xf   : > { %p738_p7 = scmp.ge.s32.totalorder %s926_s28, 1  ;;  %s1149_s8 = smov (%p41_p4, %s1147_s8), 0 }
  0x10   : > { %1133 = sst [smem:[#allocation7_spill]] %s1149_s8  ;;  %p1023_p8 = por %p209_p6, %p208_p5 }
  0x11   : > { %p313_p9 = scmp.lt.s32.totalorder %s926_s28, 9  ;;  %s185_s12 = ssub.s32 %s922_s27, %s1149_s8 }
  0x12   : > { %s192_s13 = sadd.s32 1, %s906_s23  ;;  %s187_s14 = sor.u32 %s186_s9, %s185_s12 }
  0x13   : > { %p314_p10 = pnand %p738_p7, %p313_p9  ;;  %p190_p11 = scmp.eq.s32.totalorder %s187_s14, 0 }
  0x14   : > { %p390_p12 = scmp.lt.s32.totalorder (!%p314_p10), %s914_s25, 1  ;;  %p392_p13 = scmp.lt.s32.totalorder (!%p314_p10), %s910_s24, 3 }
  0x15   : > { %s1032_s15 = scalar_select %p190_p11, %s906_s23, %s192_s13  }
  0x16   : > { %317 = sbr.rel (%p314_p10) target bundleno = 564 (0x234), region = 40  ;;  %s1135_s1 = sld [smem:[#allocation8_spill]] (!%p314_p10) }
  0x17   : > { %s374_s29 = sand.u32 (!%p314_p10), 1, %s902_s22  }
  0x18   : > { %s1059_s12 = sshll.u32 (!%p314_p10), %s374_s29, 3 }
  0x19   : > { %s376_s7 = scalar_lea.vmem (!%p314_p10), [#allocation2], %s1059_s12  ;;  %s508_s12 = scalar_lea.sflag (!%p314_p10), [#allocation3], %s374_s29 }
  0x1a   : > { %s534_s30 = sshll.u32 (!%p314_p10), %s376_s7, 4  ;;  %s535_s30 = int_to_ptr.vmem [resolvable:$true] %s534_s30 }
  0x1b   : > { %s391_s16 = scalar_select %p390_p12, %s914_s25, 1  ;;  %vm446_vm0 = vcmask 64512   ;;  %vm487_vm1 = vcmask 1043456  }
  0x1c   : > { %s393_s17 = scalar_select %p392_p13, %s910_s24, 3 }
  0x1d   : > { %s740_s18 = sshll.u32 %s391_s16, 2 }
  0x1e   : > { %s398_s19 = sadd.s32 %s740_s18, %s393_s17  ;;  %s746_s18 = sshll.u32 %s393_s17, 3 }
  0x1f   : > { %s1038_s20 = sshll.u32 %s398_s19, 2  ;;  %s747_s19 = sshll.u32 %s391_s16, 3 }
  0x20   : > { %s408_s9 = scalar_lea.vmem %s1135_s1, %s1038_s20  ;;  %s400_s14 = scalar_lea.vmem %s1119_s0, %s1038_s20 }
  0x21   : > { %v444_v0 = vld [vmem:[%s408_s9] sm:$0xf]  ;;  %s423_s27 = scalar_lea.vmem %s1122_s3, %s746_s18  ;;  %s430_s9 = scalar_lea.vmem %s1123_s4, %s747_s19 }
  0x22   : > { %v451_v1 = vsel %vm446_vm0, %v444_v0, 0  ;;  %v443_v2 = vld [vmem:[%s400_s14] sm:$0xf]  ;;  %s416_s8 = scalar_lea.vmem %s1121_s2, %s1038_s20  ;;  %s753_s16 = sshll.u32 %s914_s25, 2 }
  0x23   : > { %460 = vmatpush.bf16.xpose.msra.mxu0 %v451_v1  ;;  %v467_v4 = vld [vmem:[%s423_s27] sm:$0xff]  ;;  %s530_s17 = sadd.s32 %s910_s24, %s753_s16 }
  0x24   : > { %v469_v6 = vld [vmem:[%s430_s9] sm:$0xff]  ;;  %s754_s13 = sshll.u32 %s530_s17, 3 }
  0x25   : > { %v445_v16 = vld [vmem:[%s416_s8] sm:$0xf]  ;;  %s532_s19 = scalar_lea.hbm %s1124_s5, %s754_s13  ;;  %s852_s8 = scalar_lea.hbm %s1124_s5, 64 }
  0x26   : > { %v489_v17 = vsel %vm487_vm1, %v445_v16, 0  ;;  %s536_s9 = sshll.u32 %s532_s19, 4  ;;  %s537_s9 = int_to_ptr.hbm [resolvable:$true] %s536_s9 }
  0x27   : > { %498 = vmatpush.bf16.msra.mxu1 %v489_v17  ;;  %s846_s1 = sshra.s32 %s537_s9, 4  ;;  %s847_s1 = int_to_ptr.hbm [resolvable:$true] %s846_s1 }
  0x28   : > { %s848_s27 = scalar_lea.hbm %s847_s1, 8  ;;  %p853_p4 = scmp.lt.s32.totalorder %s847_s1, %s1124_s5 }
  0x29   : > { %p849_p0 = scmp.ne.s32.totalorder %s847_s1, %s848_s27  ;;  %p854_p5 = scmp.lt.s32.totalorder %s852_s8, %s848_s27 }
  0x2a   : > { %750 = vmatmul.msk.bf16.vlgmr.msra.gmra.mxu0 %vm446_vm0, %v443_v2 }
  0x2b   : > { %p850_p1 = pnand %p849_p0, %p1014_p3  ;;  %p855_p6 = por %p854_p5, %p853_p4 }
  0x2d   : > { %p851_p2 = pneg %p850_p1 }
  0x2f   : > { %p856_p7 = pnand %p855_p6, %p851_p2 }
  0xa7   : > { %v462_v3 = vpop.f32.mrf.mxu0 }
  0xa8   : > { %v466_v5 = vmul.f32 0.35355338, %v462_v3 }
  0xaa   : > { %v468_v7 = vadd.f32 %v467_v4, %v466_v5 }
  0xac   : > { %v470_v8 = vadd.f32 %v469_v6, %v468_v7 }
  0xae   : > { %v472_v9 = vsel %vm446_vm0, %v470_v8, -inf  ;;  %471 = vst.msk [vmem:[%s376_s7] sm:$0xff] %vm446_vm0, %v470_v8 }
  0xaf   : > { %473 = vmax.xlane.f32.xlu0 %v472_v9  ;;  %v464_v10 = vpop.f32.mrf.mxu0 }
 0x122   : > { %v474_v11 = vpop.xlane.xlu0 %473 }
 0x123   : > { %v475_v12 = vsub.f32 %v470_v8, %v474_v11 }
 0x125   : > { %v476_v13 = vmul.f32 1.442695, %v475_v12 }
 0x127   : > { %828 = vpow2.f32 %v476_v13 }
 0x12d   : > { %v829_v14 = vpop.eup %828 }
 0x12e   : > { %v478_v15 = vsel %vm446_vm0, %v829_v14, 0.0 }
 0x12f   : > { %479 = vadd.xlane.f32.xlu0 %v478_v15 }
 0x1a2   : > { %v480_v18 = vpop.xlane.xlu0 %479 }
 0x1a3   : > { %830 = vrcp.f32 %v480_v18 }
 0x1a9   : > { %v831_v19 = vpop.eup %830 }
 0x1aa   : > { %v482_v20 = vmul.f32 %v831_v19, %v829_v14 }
 0x1ac   : > { %v483_v21 = vpack.c.bf16 %v482_v20, %v482_v20 }
 0x1ae   : > { %751 = vmatmul.msk.bf16.vlgmr.msra.gmra.mxu1 %vm446_vm0, %v483_v21 }
 0x1af   : > { %859 = shalt.err (!%p856_p7)
}
 0x1b0   : > { %757 = dma.vmem_to_hbm [thread:$0]  (%p1014_p3), %s535_s30, 128, %s537_s9, %s508_s12   ;;  %vm505_vm2 = vcmask 60416  }
 0x1b1   : > { %s441_s13 = scalar_lea.vmem %s1125_s6, %s1038_s20 }
 0x22b   : > { %v500_v22 = vpop.f32.mrf.mxu1 }
 0x22c   : > { %v504_v23 = vpack.c.bf16 %v500_v22, %v500_v22 }
 0x22e   : > { %506 = vst.msk [vmem:[%s441_s13] sm:$0xf] %vm505_vm2, %v504_v23 }
 0x233   : > { %v502_v24 = vpop.f32.mrf.mxu1 }
 0x234 PF: > { %p763_p9 = scmp.ge.s32.totalorder %s926_s28, 2  ;;  %s551_s14 = sand.u32 1, %s898_s21  }
 0x235   : > { %s552_s10 = scalar_lea.sflag [#allocation3], %s551_s14 }
 0x236   : > { %p760_p10 = pnand %p763_p9, %p1023_p8 }
 0x238   : > { %p761_p11 = pneg %p760_p10 }
 0x23a   : > { %893 = dma.done.wait (%p761_p11), %s552_s10, 128  }
 0x23b   : > { %895 = vsyncadd (%p761_p11), %s552_s10, 4294967168  ;;  %s20_s28 = sadd.s32 1, %s926_s28   ;;  %s1136_s25 = sld [smem:[#allocation5_spill]] }
 0x23c   : > { %p17_p3 = scmp.ge.s32.totalorder %s20_s28, 10   ;;  %s1137_s20 = sld [smem:[#allocation6_spill]] }
 0x23d   : > { %s1138_s27 = sld [smem:[#allocation7_spill]]  ;;  %s1139_s21 = smov %s902_s22 }
 0x23e   : > { %s1140_s22 = smov %s906_s23  ;;  %s1141_s23 = smov %s1032_s15 }
 0x23f   : > { %s1142_s24 = smov %s918_s26  ;;  %19 = sbr.rel (!%p17_p3) target bundleno = 7 (0x7), region = 99 }
 0x242   : > { %s1143_s26 = smov %s1137_s20 }
 0x244   :  { %572 = vsyncpa [#allocation3], 1 }
 0x245   :  { %574 = vsyncpa [#allocation3 + $0x1], 1 }

// kernel: encoder_forward.12
= control target key start
LH: loop header
LB: loop body
LE: loop exit
PB: predicated region body
PF: predicated region fallthrough
CT: control target
= control target key end

     0   :  { %vm51_vm0 = vcmask 261120   ;;  %s223_s1 = inlined_call_operand.vmem [shape: bf16[32,128], index: 1, kind: input, shape index: {}]   ;;  %s224_s2 = inlined_call_operand.vmem [shape: f32[1,128], index: 2, kind: input, shape index: {}]   ;;  %s225_s0 = inlined_call_operand.vmem [shape: bf16[16,32], index: 0, kind: input, shape index: {}]   ;;  %s226_s4 = inlined_call_operand.vmem [shape: f32[1,128], index: 4, kind: input, shape index: {}]   ;;  %s227_s5 = inlined_call_operand.vmem [shape: f32[1,128], index: 5, kind: input, shape index: {}]   ;;  %s228_s3 = inlined_call_operand.vmem [shape: f32[16,128], index: 3, kind: input, shape index: {}]   ;;  %s229_s6 = inlined_call_operand.vmem [shape: f32[16,128], index: 6, kind: output, shape index: {}]  }
   0x1   :  { %v150_v0 = vld [vmem:[%s223_s1 + $0x8] sm:$0xff]  ;;  %v149_v1 = vld [vmem:[%s223_s1] sm:$0xff] }
   0x2   :  { %61 = vmatpush.bf16.msra.mxu0 %v150_v0  ;;  %v148_v2 = vld [vmem:[%s225_s0] sm:$0xff]  ;;  %v70_v10 = vld [vmem:[%s228_s3 + $0x8] sm:$0xff] }
   0x3   :  { %v151_v3 = vld [vmem:[%s224_s2] ss:$0 sm:$0xff] }
   0x4   :  { %v69_v5 = vld [vmem:[%s228_s3] sm:$0xff] }
   0x5   :  { %v152_v37 = vld [vmem:[%s226_s4] ss:$0 sm:$0xff] }
   0x6   :  { %62 = vmatpush.bf16.msra.mxu0 %v149_v1  ;;  %v153_v40 = vld [vmem:[%s227_s5] ss:$0 sm:$0xff] }
   0x9   :  { %147 = vmatmul.msk.bf16.vlgmr.msra.gmra.mxu0 %vm51_vm0, %v148_v2 }
  0x86   :  { %v64_v4 = vpop.f32.mrf.mxu0 }
  0x87   :  { %v65_v6 = vadd.f32 %v151_v3, %v64_v4 }
  0x89   :  { %v71_v7 = vadd.f32 %v69_v5, %v65_v6 }
  0x8b   :  { %73 = vadd.xlane.f32.xlu0 %v71_v7  ;;  %v79_v8 = vmul.f32 %v71_v7, %v71_v7 }
  0x8d   :  { %81 = vadd.xlane.f32.xlu1 %v79_v8 }
  0x8e   :  { %v66_v9 = vpop.f32.mrf.mxu0 }
  0x8f   :  { %v67_v11 = vadd.f32 %v151_v3, %v66_v9 }
  0x91   :  { %v72_v12 = vadd.f32 %v70_v10, %v67_v11 }
  0x93   :  { %75 = vadd.xlane.f32.xlu0 %v72_v12  ;;  %v80_v13 = vmul.f32 %v72_v12, %v72_v12 }
  0x95   :  { %83 = vadd.xlane.f32.xlu1 %v80_v13 }
  0xfe   :  { %v74_v14 = vpop.xlane.xlu0 %73 }
  0xff   :  { %v77_v15 = vmul.f32 0.03125, %v74_v14 }
 0x100   :  { %v82_v16 = vpop.xlane.xlu1 %81 }
 0x101   :  { %v87_v17 = vmul.f32 %v77_v15, %v77_v15  ;;  %v85_v18 = vmul.f32 0.03125, %v82_v16  ;;  %v91_v36 = vsub.f32 %v71_v7, %v77_v15 }
 0x103   :  { %v89_v19 = vsub.f32 %v85_v18, %v87_v17 }
 0x105   :  { %v93_v20 = vadd.f32 1e-06, %v89_v19 }
 0x106   :  { %v76_v21 = vpop.xlane.xlu0 %75 }
 0x107   :  { %154 = vrsqrt.f32 %v93_v20  ;;  %v78_v22 = vmul.f32 0.03125, %v76_v21  ;;  %vm101_vm2 = vweird.f32 %v93_v20 }
 0x108   :  { %v84_v23 = vpop.xlane.xlu1 %83 }
 0x109   :  { %v88_v24 = vmul.f32 %v78_v22, %v78_v22  ;;  %v86_v25 = vmul.f32 0.03125, %v84_v23  ;;  %v92_v47 = vsub.f32 %v72_v12, %v78_v22 }
 0x10b   :  { %v90_v26 = vsub.f32 %v86_v25, %v88_v24 }
 0x10d   :  { %v155_v27 = vpop.eup %154  ;;  %v94_v28 = vadd.f32 1e-06, %v90_v26 }
 0x10e   :  { %v96_v29 = vmul.f32 %v155_v27, %v93_v20  ;;  %vm102_vm1 = vweird.f32 %v155_v27 }
 0x10f   :  { %156 = vrsqrt.f32 %v94_v28  ;;  %vm103_vm3 = vmor %vm101_vm2, %vm102_vm1  ;;  %vm111_vm5 = vweird.f32 %v94_v28 }
 0x110   :  { %v97_v30 = vmul.f32 %v155_v27, %v96_v29 }
 0x112   :  { %v98_v31 = vmul.f32 0.5, %v97_v30 }
 0x114   :  { %v99_v32 = vsub.f32 1.5, %v98_v31 }
 0x115   :  { %v157_v33 = vpop.eup %156 }
 0x116   :  { %v100_v34 = vmul.f32 %v155_v27, %v99_v32  ;;  %v106_v35 = vmul.f32 %v157_v33, %v94_v28  ;;  %vm112_vm4 = vweird.f32 %v157_v33 }
 0x117   :  { %vm113_vm6 = vmor %vm111_vm5, %vm112_vm4 }
 0x118   :  { %v104_v38 = vsel %vm103_vm3, %v155_v27, %v100_v34  ;;  %v107_v39 = vmul.f32 %v157_v33, %v106_v35 }
 0x119   :  { %v115_v41 = vmul.f32 %v104_v38, %v91_v36 }
 0x11a   :  { %v108_v42 = vmul.f32 0.5, %v107_v39 }
 0x11b   :  { %v121_v43 = vmul.f32 %v152_v37, %v115_v41 }
 0x11c   :  { %v109_v44 = vsub.f32 1.5, %v108_v42 }
 0x11d   :  { %v127_v45 = vadd.f32 %v153_v40, %v121_v43 }
 0x11e   :  { %v110_v46 = vmul.f32 %v157_v33, %v109_v44 }
 0x11f   :  { %129 = vst [vmem:[%s229_s6] sm:$0xff] %v127_v45 }
 0x120   :  { %v114_v48 = vsel %vm113_vm6, %v157_v33, %v110_v46 }
 0x121   :  { %v116_v49 = vmul.f32 %v114_v48, %v92_v47 }
 0x123   :  { %v122_v50 = vmul.f32 %v152_v37, %v116_v49 }
 0x125   :  { %v128_v51 = vadd.f32 %v153_v40, %v122_v50 }
 0x127   :  { %130 = vst [vmem:[%s229_s6 + $0x8] sm:$0xff] %v128_v51 }

// kernel: encoder_forward.13
= control target key start
LH: loop header
LB: loop body
LE: loop exit
PB: predicated region body
PF: predicated region fallthrough
CT: control target
= control target key end

     0   :  { %vm42_vm0 = vcmask 261120   ;;  %s127_s1 = inlined_call_operand.vmem [shape: bf16[32,128], index: 1, kind: input, shape index: {}]   ;;  %s128_s2 = inlined_call_operand.vmem [shape: f32[1,128], index: 2, kind: input, shape index: {}]   ;;  %s129_s0 = inlined_call_operand.vmem [shape: bf16[16,32], index: 0, kind: input, shape index: {}]   ;;  %s130_s3 = inlined_call_operand.vmem [shape: bf16[16,128], index: 3, kind: output, shape index: {}]  }
   0x1   :  { %v85_v0 = vld [vmem:[%s127_s1 + $0x8] sm:$0xff]  ;;  %v84_v1 = vld [vmem:[%s127_s1] sm:$0xff] }
   0x2   :  { %52 = vmatpush.bf16.msra.mxu0 %v85_v0  ;;  %v83_v2 = vld [vmem:[%s129_s0] sm:$0xff] }
   0x3   :  { %v91_v4 = vld [vmem:[%s128_s2] ss:$0 sm:$0xff] }
   0x6   :  { %53 = vmatpush.bf16.msra.mxu0 %v84_v1 }
   0x9   :  { %82 = vmatmul.msk.bf16.vlgmr.msra.gmra.mxu0 %vm42_vm0, %v83_v2 }
  0x86   :  { %v55_v3 = vpop.f32.mrf.mxu0 }
  0x87   :  { %v56_v5 = vadd.f32 %v91_v4, %v55_v3 }
  0x89   :  { %v60_v8 = vmax.f32 %v56_v5, 0.0 }
  0x8e   :  { %v57_v6 = vpop.f32.mrf.mxu0 }
  0x8f   :  { %v58_v7 = vadd.f32 %v91_v4, %v57_v6 }
  0x91   :  { %v61_v9 = vmax.f32 %v58_v7, 0.0 }
  0x93   :  { %v89_v10 = vpack.c.bf16 %v61_v9, %v60_v8 }
  0x95   :  { %90 = vst [vmem:[%s130_s3] sm:$0xff] %v89_v10  }

// kernel: encoder_forward.14
= control target key start
LH: loop header
LB: loop body
LE: loop exit
PB: predicated region body
PF: predicated region fallthrough
CT: control target
= control target key end

     0   :  { %vm67_vm0 = vcmask 523264   ;;  %s255_s1 = inlined_call_operand.vmem [shape: bf16[64,128], index: 1, kind: input, shape index: {}]   ;;  %s256_s2 = inlined_call_operand.vmem [shape: f32[1,128], index: 2, kind: input, shape index: {}]   ;;  %s257_s0 = inlined_call_operand.vmem [shape: bf16[16,64], index: 0, kind: input, shape index: {}]   ;;  %s258_s4 = inlined_call_operand.vmem [shape: f32[1,128], index: 4, kind: input, shape index: {}]   ;;  %s259_s5 = inlined_call_operand.vmem [shape: f32[1,128], index: 5, kind: input, shape index: {}]   ;;  %s260_s3 = inlined_call_operand.vmem [shape: f32[16,128], index: 3, kind: input, shape index: {}]   ;;  %s261_s6 = inlined_call_operand.vmem [shape: f32[16,128], index: 6, kind: output, shape index: {}]  }
   0x1   :  { %v176_v0 = vld [vmem:[%s255_s1 + $0x18] sm:$0xff]  ;;  %v175_v1 = vld [vmem:[%s255_s1 + $0x10] sm:$0xff]  ;;  %v174_v2 = vld [vmem:[%s255_s1 + $0x8] sm:$0xff] }
   0x2   :  { %75 = vmatpush.bf16.msra.mxu0 %v176_v0  ;;  %v173_v3 = vld [vmem:[%s255_s1] sm:$0xff]  ;;  %v86_v12 = vld [vmem:[%s260_s3 + $0x8] sm:$0xff] }
   0x3   :  { %v172_v4 = vld [vmem:[%s257_s0] sm:$0xff] }
   0x4   :  { %v177_v5 = vld [vmem:[%s256_s2] ss:$0 sm:$0xff] }
   0x5   :  { %v85_v7 = vld [vmem:[%s260_s3] sm:$0xff] }
   0x6   :  { %76 = vmatpush.bf16.msra.mxu0 %v175_v1  ;;  %v178_v39 = vld [vmem:[%s258_s4] ss:$0 sm:$0xff] }
   0x7   :  { %v179_v42 = vld [vmem:[%s259_s5] ss:$0 sm:$0xff] }
   0xa   :  { %77 = vmatpush.bf16.msra.mxu0 %v174_v2 }
   0xe   :  { %78 = vmatpush.bf16.msra.mxu0 %v173_v3 }
  0x11   :  { %171 = vmatmul.msk.bf16.vlgmr.msra.gmra.mxu0 %vm67_vm0, %v172_v4 }
  0x8e   :  { %v80_v6 = vpop.f32.mrf.mxu0 }
  0x8f   :  { %v81_v8 = vadd.f32 %v177_v5, %v80_v6 }
  0x91   :  { %v87_v9 = vadd.f32 %v85_v7, %v81_v8 }
  0x93   :  { %89 = vadd.xlane.f32.xlu0 %v87_v9  ;;  %v95_v10 = vmul.f32 %v87_v9, %v87_v9 }
  0x95   :  { %97 = vadd.xlane.f32.xlu1 %v95_v10 }
  0x96   :  { %v82_v11 = vpop.f32.mrf.mxu0 }
  0x97   :  { %v83_v13 = vadd.f32 %v177_v5, %v82_v11 }
  0x99   :  { %v88_v14 = vadd.f32 %v86_v12, %v83_v13 }
  0x9b   :  { %91 = vadd.xlane.f32.xlu0 %v88_v14  ;;  %v96_v15 = vmul.f32 %v88_v14, %v88_v14 }
  0x9d   :  { %99 = vadd.xlane.f32.xlu1 %v96_v15 }
 0x106   :  { %v90_v16 = vpop.xlane.xlu0 %89 }
 0x107   :  { %v93_v17 = vmul.f32 0.03125, %v90_v16 }
 0x108   :  { %v98_v18 = vpop.xlane.xlu1 %97 }
 0x109   :  { %v103_v19 = vmul.f32 %v93_v17, %v93_v17  ;;  %v101_v20 = vmul.f32 0.03125, %v98_v18  ;;  %v107_v38 = vsub.f32 %v87_v9, %v93_v17 }
 0x10b   :  { %v105_v21 = vsub.f32 %v101_v20, %v103_v19 }
 0x10d   :  { %v109_v22 = vadd.f32 1e-06, %v105_v21 }
 0x10e   :  { %v92_v23 = vpop.xlane.xlu0 %91 }
 0x10f   :  { %180 = vrsqrt.f32 %v109_v22  ;;  %v94_v24 = vmul.f32 0.03125, %v92_v23  ;;  %vm117_vm2 = vweird.f32 %v109_v22 }
 0x110   :  { %v100_v25 = vpop.xlane.xlu1 %99 }
 0x111   :  { %v104_v26 = vmul.f32 %v94_v24, %v94_v24  ;;  %v102_v27 = vmul.f32 0.03125, %v100_v25  ;;  %v108_v49 = vsub.f32 %v88_v14, %v94_v24 }
 0x113   :  { %v106_v28 = vsub.f32 %v102_v27, %v104_v26 }
 0x115   :  { %v181_v29 = vpop.eup %180  ;;  %v110_v30 = vadd.f32 1e-06, %v106_v28 }
 0x116   :  { %v112_v31 = vmul.f32 %v181_v29, %v109_v22  ;;  %vm118_vm1 = vweird.f32 %v181_v29 }
 0x117   :  { %182 = vrsqrt.f32 %v110_v30  ;;  %vm119_vm3 = vmor %vm117_vm2, %vm118_vm1  ;;  %vm127_vm5 = vweird.f32 %v110_v30 }
 0x118   :  { %v113_v32 = vmul.f32 %v181_v29, %v112_v31 }
 0x11a   :  { %v114_v33 = vmul.f32 0.5, %v113_v32 }
 0x11c   :  { %v115_v34 = vsub.f32 1.5, %v114_v33 }
 0x11d   :  { %v183_v35 = vpop.eup %182 }
 0x11e   :  { %v116_v36 = vmul.f32 %v181_v29, %v115_v34  ;;  %v122_v37 = vmul.f32 %v183_v35, %v110_v30  ;;  %vm128_vm4 = vweird.f32 %v183_v35 }
 0x11f   :  { %vm129_vm6 = vmor %vm127_vm5, %vm128_vm4 }
 0x120   :  { %v120_v40 = vsel %vm119_vm3, %v181_v29, %v116_v36  ;;  %v123_v41 = vmul.f32 %v183_v35, %v122_v37 }
 0x121   :  { %v131_v43 = vmul.f32 %v120_v40, %v107_v38 }
 0x122   :  { %v124_v44 = vmul.f32 0.5, %v123_v41 }
 0x123   :  { %v137_v45 = vmul.f32 %v178_v39, %v131_v43 }
 0x124   :  { %v125_v46 = vsub.f32 1.5, %v124_v44 }
 0x125   :  { %v143_v47 = vadd.f32 %v179_v42, %v137_v45 }
 0x126   :  { %v126_v48 = vmul.f32 %v183_v35, %v125_v46 }
 0x127   :  { %145 = vst [vmem:[%s261_s6] sm:$0xff] %v143_v47 }
 0x128   :  { %v130_v50 = vsel %vm129_vm6, %v183_v35, %v126_v48 }
 0x129   :  { %v132_v51 = vmul.f32 %v130_v50, %v108_v49 }
 0x12b   :  { %v138_v52 = vmul.f32 %v178_v39, %v132_v51 }
 0x12d   :  { %v144_v53 = vadd.f32 %v179_v42, %v138_v52 }
 0x12f   :  { %146 = vst [vmem:[%s261_s6 + $0x8] sm:$0xff] %v144_v53 }

</bundles_post_ra>
